<compile_context>
chip_gen: v7x
topology: tpu7x:2x2x1
jax: 0.10.0
libtpu: 0.0.40
codegen_flags: <defaults>
</compile_context>

<pallas_src>
import functools

import jax
import jax.numpy as jnp
from jax.experimental import pallas as pl
from jax.experimental.pallas import tpu as pltpu

_VMEM_LIMIT_BYTES = 48 * 1024 * 1024  # explicit; > v5e's 16 MiB default, < v7x's 64 MiB


def _pick_lane_tile(hw, max_tile=512):
    """Largest multiple of 128 that divides hw, capped at max_tile."""
    if hw % 128 != 0:
        # TODO(synk): pad hw to a multiple of 128 for realistic non-aligned sizes.
        return hw
    best = hw
    t = 128
    while t <= min(hw, max_tile):
        if hw % t == 0:
            best = t
        t += 128
    return best


# ----------------------------- classifier kernel ----------------------------

def _cls_kernel(y_ref, x_ref, aug_w_ref, aug_b_ref, cls_w_ref, cls_b_ref,
                aug_out_ref, nll_ref, pool_acc_ref, *, hw):
    """Grid (N, T).  Per tile: aug = tanh(W_aug @ x) (bf16 MXU, f32 acc),
    accumulate per-sample GAP sums; at the last hw-tile: classifier logits,
    per-sample NLL (label read from SMEM scalar prefetch)."""
    f32 = jnp.float32
    n = pl.program_id(0)
    t = pl.program_id(1)

    @pl.when(t == 0)
    def _():
        pool_acc_ref[...] = jnp.zeros_like(pool_acc_ref)

    xb = x_ref[0].astype(jnp.bfloat16)                               # (C, tile)
    aug = jnp.tanh(
        jnp.dot(aug_w_ref[...], xb, preferred_element_type=f32)
        + aug_b_ref[...])                                            # (C, tile) f32
    aug_out_ref[0] = aug.astype(aug_out_ref.dtype)

    # Global-average-pool partial sums: XLU lane reduction, no pool matrix.
    pool_acc_ref[...] = pool_acc_ref[...] + jnp.sum(aug, axis=1, keepdims=True)

    @pl.when(t == pl.num_programs(1) - 1)
    def _():
        pooled = pool_acc_ref[...] * f32(1.0 / hw)                   # (C, 1)
        logits = (jnp.dot(cls_w_ref[...], pooled, preferred_element_type=f32)
                  + cls_b_ref[...])                                   # (K, 1)
        m = jnp.max(logits, axis=0, keepdims=True)
        z = logits - m
        lse = jnp.log(jnp.sum(jnp.exp(z), axis=0, keepdims=True))
        logp = z - lse                                                # (K, 1)
        y_n = y_ref[n]                                                # SMEM scalar
        cls_id = jax.lax.broadcasted_iota(jnp.int32, logp.shape, 0)
        nll = -jnp.sum(jnp.where(cls_id == y_n, logp, 0.0))
        nll_ref[...] = jnp.broadcast_to(nll, nll_ref.shape)


def fused_classifier_loss(x3, y, aug_w_bf16, aug_b, cls_w, cls_b, *, tile_hw):
    """x3: (N, C, hw) activations.  Returns (aug_out (N,C,hw) f32, nll (N,))."""
    N, C, hw = x3.shape
    K = cls_w.shape[0]
    T = hw // tile_hw

    grid_spec = pltpu.PrefetchScalarGridSpec(
        num_scalar_prefetch=1,                    # y -> SMEM, visible to index_maps
        grid=(N, T),
        in_specs=[
            pl.BlockSpec((1, C, tile_hw), lambda n, t, y_: (n, 0, t)),   # x tile
            pl.BlockSpec((C, C), lambda n, t, y_: (0, 0)),               # aug_w (bf16)
            pl.BlockSpec((C, 1), lambda n, t, y_: (0, 0)),               # aug_b
            pl.BlockSpec((K, C), lambda n, t, y_: (0, 0)),               # cls_w
            pl.BlockSpec((K, 1), lambda n, t, y_: (0, 0)),               # cls_b
        ],
        out_specs=(
            pl.BlockSpec((1, C, tile_hw), lambda n, t, y_: (n, 0, t)),   # aug_out
            pl.BlockSpec((1, 8, 128), lambda n, t, y_: (n, 0, 0)),       # per-sample NLL
        ),
        scratch_shapes=[pltpu.VMEM((C, 1), jnp.float32)],                # GAP accumulator
    )

    aug_out, nll = pl.pallas_call(
        functools.partial(_cls_kernel, hw=hw),
        grid_spec=grid_spec,
        out_shape=(jax.ShapeDtypeStruct((N, C, hw), jnp.float32),
                   jax.ShapeDtypeStruct((N, 8, 128), jnp.float32)),
        compiler_params=pltpu.CompilerParams(
            dimension_semantics=("parallel", "arbitrary"),
            vmem_limit_bytes=_VMEM_LIMIT_BYTES),
    )(y, x3, aug_w_bf16, aug_b, cls_w, cls_b)
    return aug_out, nll[:, 0, 0]


# ----------------------------- perceptual kernel ----------------------------

def _perc_kernel(x_ref, t_ref, aug_w_ref, aug_b_ref,
                 w0_ref, b0_ref, w1_ref, b1_ref, w2_ref, b2_ref,
                 loss_ref, ga_ref, gt_ref, c0_ref, c1_ref,
                 *, hw, feat, alpha, beta, consider_content,
                 style_weights, content_weights):
    """Grid (N, T).  One image's style stack live at a time; per-sample Gram
    matrices and content partial sums accumulate across hw tiles; finalize at
    the last tile into a per-sample scalar."""
    f32 = jnp.float32
    bf16 = jnp.bfloat16
    t_idx = pl.program_id(1)

    @pl.when(t_idx == 0)
    def _():
        ga_ref[...] = jnp.zeros_like(ga_ref)
        gt_ref[...] = jnp.zeros_like(gt_ref)
        c0_ref[...] = jnp.zeros_like(c0_ref)
        c1_ref[...] = jnp.zeros_like(c1_ref)

    x_b = x_ref[0].astype(bf16)                                      # (C, tile)
    tgt_b = t_ref[0].astype(bf16)

    aug = jnp.tanh(jnp.dot(aug_w_ref[...], x_b, preferred_element_type=f32)
                   + aug_b_ref[...])                                 # (C, tile) f32

    def layer(w_ref, b_ref, h_in_bf):                                # (F, tile) f32
        return jnp.maximum(
            jnp.dot(w_ref[...], h_in_bf, preferred_element_type=f32)
            + b_ref[...], 0.0)

    def gram(h_bf):                                                  # (F, F) f32
        return jax.lax.dot_general(h_bf, h_bf, (((1,), (1,)), ((), ())),
                                   preferred_element_type=f32)

    # --- augmented-source stack: fold into Gram acc, keep h0/h1 for content ---
    a0 = layer(w0_ref, b0_ref, aug.astype(bf16))
    a0b = a0.astype(bf16)
    ga_ref[0] = ga_ref[0] + gram(a0b)
    a1 = layer(w1_ref, b1_ref, a0b)
    a1b = a1.astype(bf16)
    ga_ref[1] = ga_ref[1] + gram(a1b)
    a2b = layer(w2_ref, b2_ref, a1b).astype(bf16)
    ga_ref[2] = ga_ref[2] + gram(a2b)

    # --- source (x) stack: only the two content layers, only if needed ---
    if consider_content:
        s0 = layer(w0_ref, b0_ref, x_b)
        d0 = a0 - s0
        c0_ref[...] = c0_ref[...] + jnp.sum(d0 * d0, axis=(0, 1), keepdims=True)
        s1 = layer(w1_ref, b1_ref, s0.astype(bf16))
        d1 = a1 - s1
        c1_ref[...] = c1_ref[...] + jnp.sum(d1 * d1, axis=(0, 1), keepdims=True)

    # --- target stack: fold into Gram acc, nothing kept live ---
    t0b = layer(w0_ref, b0_ref, tgt_b).astype(bf16)
    gt_ref[0] = gt_ref[0] + gram(t0b)
    t1b = layer(w1_ref, b1_ref, t0b).astype(bf16)
    gt_ref[1] = gt_ref[1] + gram(t1b)
    t2b = layer(w2_ref, b2_ref, t1b).astype(bf16)
    gt_ref[2] = gt_ref[2] + gram(t2b)

    # --- finalize per-sample loss at the last hw tile ---
    @pl.when(t_idx == pl.num_programs(1) - 1)
    def _():
        gnorm = f32(1.0 / (feat * hw))        # Gram = (f @ f.T) / (F * HW)
        style = jnp.zeros((1, 1), f32)
        for k in range(3):
            d = (ga_ref[k] - gt_ref[k]) * gnorm
            style = style + f32(style_weights[k]) * jnp.sum(
                d * d, axis=(0, 1), keepdims=True)
        style = style * f32(1.0 / (feat * feat))
        total = f32(alpha) * style
        if consider_content:
            cnorm = f32(1.0 / (feat * hw))
            content = (f32(content_weights[0]) * c0_ref[...]
                       + f32(content_weights[1]) * c1_ref[...]) * cnorm
            total = total + f32(beta) * content
        loss_ref[...] = jnp.broadcast_to(total, loss_ref.shape)


def fused_perceptual_loss(x3, t3, aug_w, aug_b, w0, b0, w1, b1, w2, b2, *,
                          tile_hw, alpha, beta, consider_content,
                          style_weights, content_weights):
    """x3: (N, C, hw), t3: (Nt, C, hw) (Nt==1 is broadcast via the index_map).
    Returns per-sample loss (N,)."""
    N, C, hw = x3.shape
    Nt = t3.shape[0]
    F = w0.shape[0]
    T = hw // tile_hw

    if Nt == 1:
        t_map = lambda n, t: (0, 0, t)       # broadcast single target, no host tile
    else:
        t_map = lambda n, t: (n, 0, t)       # uses first N targets (ref. slicing)
    const2 = lambda n, t: (0, 0)

    kernel = functools.partial(
        _perc_kernel, hw=hw, feat=F, alpha=float(alpha), beta=float(beta),
        consider_content=bool(consider_content),
        style_weights=tuple(float(w) for w in style_weights),
        content_weights=tuple(float(w) for w in content_weights))

    grid_spec = pltpu.PrefetchScalarGridSpec(
        num_scalar_prefetch=0,
        grid=(N, T),
        in_specs=[
            pl.BlockSpec((1, C, tile_hw), lambda n, t: (n, 0, t)),   # x tile
            pl.BlockSpec((1, C, tile_hw), t_map),                    # target tile
            pl.BlockSpec((C, C), const2),                            # aug_w (bf16)
            pl.BlockSpec((C, 1), const2),                            # aug_b
            pl.BlockSpec((F, C), const2),                            # sty_w0 (bf16)
            pl.BlockSpec((F, 1), const2),                            # sty_b0
            pl.BlockSpec((F, F), const2),                            # sty_w1 (bf16)
            pl.BlockSpec((F, 1), const2),                            # sty_b1
            pl.BlockSpec((F, F), const2),                            # sty_w2 (bf16)
            pl.BlockSpec((F, 1), const2),                            # sty_b2
        ],
        out_specs=pl.BlockSpec((1, 8, 128), lambda n, t: (n, 0, 0)),
        scratch_shapes=[
            pltpu.VMEM((3, F, F), jnp.float32),   # aug Gram accumulators
            pltpu.VMEM((3, F, F), jnp.float32),   # target Gram accumulators
            pltpu.VMEM((1, 1), jnp.float32),      # content layer-0 partial sum
            pltpu.VMEM((1, 1), jnp.float32),      # content layer-1 partial sum
        ],
    )

    per_sample = pl.pallas_call(
        kernel,
        grid_spec=grid_spec,
        out_shape=jax.ShapeDtypeStruct((N, 8, 128), jnp.float32),
        compiler_params=pltpu.CompilerParams(
            dimension_semantics=("parallel", "arbitrary"),
            vmem_limit_bytes=_VMEM_LIMIT_BYTES),
    )(x3, t3, aug_w, aug_b, w0, b0, w1, b1, w2, b2)
    return per_sample[:, 0, 0]


# ---------------------------- LossHandler (JAX) ----------------------------

class LossHandlerPallas:
    """Mirrors LossHandler.forward (cls / loss_perceptual branches)."""

    def __init__(self, params, weight_decay=1e-4, consider_content=True,
                 style_weights=(1.0, 1.0, 1.0), content_weights=(1.0, 1.0),
                 alpha=1.0, beta=1.0, vae_type="UNIT", recLoss=False,
                 max_lane_tile=512):
        # PyTorch-style (out, in) weights; kept in f32 (weight-decay uses them),
        # bf16 copies for the MXU are constant-folded under jit.
        self.params = {k: jnp.asarray(v, jnp.float32) for k, v in params.items()}
        self.weight_decay = float(weight_decay)
        self.consider_content = bool(consider_content)
        self.style_weights = tuple(style_weights)
        self.content_weights = tuple(content_weights)
        self.alpha = float(alpha)
        self.beta = float(beta)
        self.vae_type = vae_type
        self.recLoss = recLoss
        self.max_lane_tile = int(max_lane_tile)
        self._cls_jit = jax.jit(self._loss_classifier_impl)
        self._perc_jit = jax.jit(self._loss_perceptual_impl)

    def forward(self, x, y, target_imgs, ori_targets, c=None, loss="cls"):
        if loss == "cls":
            return self.loss_classifier(x, y, c)
        elif loss == "loss_perceptual":
            return self.loss_perceptual(x, y, target_imgs, ori_targets, c)
        else:
            raise NotImplementedError

    # -- classifier branch --
    def _loss_classifier_impl(self, x, y):
        p = self.params
        N, C, H, W = x.shape
        hw = H * W
        x3 = x.reshape(N, C, hw)                       # free reshape, no transpose
        tile_hw = _pick_lane_tile(hw, self.max_lane_tile)

        aug_out, nll = fused_classifier_loss(
            x3, y.astype(jnp.int32),
            p["aug_w"].astype(jnp.bfloat16), p["aug_b"].reshape(-1, 1),
            p["cls_w"], p["cls_b"].reshape(-1, 1),
            tile_hw=tile_hw)

        loss = jnp.mean(nll)                           # F.cross_entropy mean over batch
        if self.weight_decay > 0:
            # manual_weight_decay over all non-bn classifier params (incl. bias,
            # matching the reference's named_parameters filter).
            loss = loss + jnp.float32(self.weight_decay * 0.5) * (
                jnp.sum(p["cls_w"] * p["cls_w"]) + jnp.sum(p["cls_b"] * p["cls_b"]))

        # torch.no_grad() equivalent on the augmentation path (forward-only).
        aug_x = jax.lax.stop_gradient(aug_out.reshape(N, C, H, W))
        return loss, aug_x

    def loss_classifier(self, x, y, c=None):
        loss, aug_x = self._cls_jit(x, y)
        res = {"loss cls. step1": loss}                # device scalar, no host sync
        return loss, res, aug_x

    # -- perceptual branch --
    def _loss_perceptual_impl(self, x, target_imgs):
        p = self.params
        N, C, H, W = x.shape
        hw = H * W
        tile_hw = _pick_lane_tile(hw, self.max_lane_tile)
        x3 = x.reshape(N, C, hw)
        Nt = target_imgs.shape[0]
        t3 = target_imgs.reshape(Nt, C, hw)
        bf16 = jnp.bfloat16

        per_sample = fused_perceptual_loss(
            x3, t3,
            p["aug_w"].astype(bf16), p["aug_b"].reshape(-1, 1),
            p["sty_w0"].astype(bf16), p["sty_b0"].reshape(-1, 1),
            p["sty_w1"].astype(bf16), p["sty_b1"].reshape(-1, 1),
            p["sty_w2"].astype(bf16), p["sty_b2"].reshape(-1, 1),
            tile_hw=tile_hw, alpha=self.alpha, beta=self.beta,
            consider_content=self.consider_content,
            style_weights=self.style_weights,
            content_weights=self.content_weights)
        loss = jnp.mean(per_sample)

        # target_imgs after the reference's repeat / slice logic.
        if Nt == 1:
            tgt_out = jnp.broadcast_to(target_imgs, (N, C, H, W))
        else:
            tgt_out = target_imgs[:N]
        return loss, tgt_out

    def loss_perceptual(self, x, y, target_imgs, ori_targets, c=None):
        loss_perc, tgt = self._perc_jit(x, target_imgs)
        res = {"step2-loss perc.": loss_perc}
        # TODO(synk): DED + recLoss reconstruction branch not implemented (vae_type='UNIT').
        return loss_perc, res, tgt


# --------------------------------- main -------------------------------------

if __name__ == "__main__":
    key = jax.random.PRNGKey(0)
    ks = jax.random.split(key, 8)

    N, C_in, H, W = 2, 4, 16, 16
    num_classes = 8
    F = 16  # style-feature channels per layer

    params = {
        "aug_w": 0.1 * jax.random.normal(ks[0], (C_in, C_in), jnp.float32),
        "aug_b": jnp.zeros((C_in,), jnp.float32),
        "cls_w": 0.1 * jax.random.normal(ks[1], (num_classes, C_in), jnp.float32),
        "cls_b": jnp.zeros((num_classes,), jnp.float32),
        "sty_w0": 0.1 * jax.random.normal(ks[2], (F, C_in), jnp.float32),
        "sty_b0": jnp.zeros((F,), jnp.float32),
        "sty_w1": 0.1 * jax.random.normal(ks[3], (F, F), jnp.float32),
        "sty_b1": jnp.zeros((F,), jnp.float32),
        "sty_w2": 0.1 * jax.random.normal(ks[4], (F, F), jnp.float32),
        "sty_b2": jnp.zeros((F,), jnp.float32),
    }

    # max_lane_tile=128 at demo size (hw=256) -> T=2, exercising the tiled
    # accumulate/finalize path; realistic sizes would use the 512 default.
    handler = LossHandlerPallas(params, weight_decay=1e-4, consider_content=True,
                                style_weights=(1.0, 1.0, 1.0),
                                content_weights=(1.0, 1.0),
                                alpha=1.0, beta=1.0, vae_type="UNIT",
                                max_lane_tile=128)

    x = jax.random.normal(ks[5], (N, C_in, H, W), jnp.float32)
    y = jnp.array([1, 5], dtype=jnp.int32)
    target_imgs = jax.random.normal(ks[6], (1, C_in, H, W), jnp.float32)
    ori_targets = jax.random.normal(ks[7], (1, C_in, H, W), jnp.float32)

    # classifier loss branch (single fused, tiled Pallas kernel)
    loss_cls, res_cls, aug_x = handler.forward(x, y, target_imgs, ori_targets, loss="cls")
    jax.block_until_ready((loss_cls, aug_x))

    # perceptual loss branch (single fused, tiled Pallas kernel)
    loss_perc, res_perc, tgt = handler.forward(x, y, target_imgs, ori_targets,
                                               loss="loss_perceptual")
    jax.block_until_ready((loss_perc, tgt))

    assert bool(jnp.isfinite(loss_cls)) and bool(jnp.isfinite(loss_perc))
    assert aug_x.shape == x.shape and tgt.shape == (N, C_in, H, W)
    print("KERNEL_OK")
</pallas_src>

<mosaic_0001>
module attributes {stable_mosaic.version = 11 : i64} {
  func.func @_cls_kernel(%arg0: i32, %arg1: i32, %arg2: memref<2xi32, #tpu.memory_space<smem>>, %arg3: memref<1x4x128xf32, #tpu.memory_space<vmem>>, %arg4: memref<4x4xbf16, #tpu.memory_space<vmem>>, %arg5: memref<4x1xf32, #tpu.memory_space<vmem>>, %arg6: memref<8x4xf32, #tpu.memory_space<vmem>>, %arg7: memref<8x1xf32, #tpu.memory_space<vmem>>, %arg8: memref<1x4x128xf32, #tpu.memory_space<vmem>>, %arg9: memref<1x8x128xf32, #tpu.memory_space<vmem>>, %arg10: memref<4x1xf32, #tpu.memory_space<vmem>>) attributes {dimension_semantics = [#tpu.dimension_semantics<parallel>, #tpu.dimension_semantics<arbitrary>], iteration_bounds = array<i64: 2, 2>, scalar_prefetch = 1 : i64, scratch_operands = 1 : i64, tpu.core_type = #tpu.core_type<tc>, window_params = [{transform_indices = @transform_0, window_bounds = array<i64: 1, 4, 128>}, {pipeline_mode = #tpu.pipeline_mode<synchronous>, transform_indices = @transform_1, window_bounds = array<i64: 4, 4>}, {pipeline_mode = #tpu.pipeline_mode<synchronous>, transform_indices = @transform_2, window_bounds = array<i64: 4, 1>}, {pipeline_mode = #tpu.pipeline_mode<synchronous>, transform_indices = @transform_3, window_bounds = array<i64: 8, 4>}, {pipeline_mode = #tpu.pipeline_mode<synchronous>, transform_indices = @transform_4, window_bounds = array<i64: 8, 1>}, {transform_indices = @transform_5, window_bounds = array<i64: 1, 4, 128>}, {transform_indices = @transform_6, window_bounds = array<i64: 1, 8, 128>}]} {
    %c0_i32 = arith.constant 0 : i32
    %0 = arith.cmpi eq, %arg1, %c0_i32 : i32
    %1 = arith.extui %0 : i1 to i32
    %c0_i32_0 = arith.constant 0 : i32
    %2 = arith.cmpi ne, %1, %c0_i32_0 : i32
    scf.if %2 {
      %cst_16 = arith.constant 0.000000e+00 : f32
      %23 = vector.broadcast %cst_16 : f32 to vector<4x1xf32>
      %c0_17 = arith.constant 0 : index
      %c0_18 = arith.constant 0 : index
      %24 = vector.load %arg10[%c0_17, %c0_18] : memref<4x1xf32, #tpu.memory_space<vmem>>, vector<4x1xf32>
      tpu.vector_store %arg10[%c0_17, %c0_18], %23 {strides = array<i32>} : memref<4x1xf32, #tpu.memory_space<vmem>>, vector<4x1xf32>,
    } else {
    }
    %c0 = arith.constant 0 : index
    %c0_1 = arith.constant 0 : index
    %c0_2 = arith.constant 0 : index
    %3 = vector.load %arg3[%c0, %c0_1, %c0_2] : memref<1x4x128xf32, #tpu.memory_space<vmem>>, vector<1x4x128xf32>
    %4 = vector.shape_cast %3 : vector<1x4x128xf32> to vector<4x128xf32>
    %5 = arith.truncf %4 : vector<4x128xf32> to vector<4x128xbf16>
    %c0_3 = arith.constant 0 : index
    %c0_4 = arith.constant 0 : index
    %6 = vector.load %arg4[%c0_3, %c0_4] : memref<4x4xbf16, #tpu.memory_space<vmem>>, vector<4x4xbf16>
    %cst = arith.constant dense<0.000000e+00> : vector<4x128xf32>
    %7 = tpu.matmul %6, %5, %cst {dimension_numbers = #tpu.dot_dimension_numbers<[1], [0], [0], [1], [0, 0, 1, 1], [], []>} : vector<4x4xbf16>, vector<4x128xbf16>, vector<4x128xf32> -> vector<4x128xf32>
    %c0_5 = arith.constant 0 : index
    %c0_6 = arith.constant 0 : index
    %8 = vector.load %arg5[%c0_5, %c0_6] : memref<4x1xf32, #tpu.memory_space<vmem>>, vector<4x1xf32>
    %9 = vector.broadcast %8 : vector<4x1xf32> to vector<4x128xf32>
    %10 = arith.addf %7, %9 : vector<4x128xf32>
    %11 = math.tanh %10 : vector<4x128xf32>
    %c0_7 = arith.constant 0 : index
    %c0_8 = arith.constant 0 : index
    %c0_9 = arith.constant 0 : index
    %12 = vector.load %arg8[%c0_7, %c0_8, %c0_9] : memref<1x4x128xf32, #tpu.memory_space<vmem>>, vector<1x4x128xf32>
    %13 = vector.shape_cast %12 : vector<1x4x128xf32> to vector<4x128xf32>
    %14 = vector.shape_cast %11 : vector<4x128xf32> to vector<1x4x128xf32>
    tpu.vector_store %arg8[%c0_7, %c0_8, %c0_9], %14 {strides = array<i32>} : memref<1x4x128xf32, #tpu.memory_space<vmem>>, vector<1x4x128xf32>,
    %c0_10 = arith.constant 0 : index
    %c0_11 = arith.constant 0 : index
    %15 = vector.load %arg10[%c0_10, %c0_11] : memref<4x1xf32, #tpu.memory_space<vmem>>, vector<4x1xf32>
    %cst_12 = arith.constant dense<0.000000e+00> : vector<4xf32>
    %16 = vector.multi_reduction <add>, %11, %cst_12 [1] : vector<4x128xf32> to vector<4xf32>
    %17 = vector.shape_cast %16 : vector<4xf32> to vector<4x1xf32>
    %18 = arith.addf %15, %17 : vector<4x1xf32>
    %c0_13 = arith.constant 0 : index
    %c0_14 = arith.constant 0 : index
    %19 = vector.load %arg10[%c0_13, %c0_14] : memref<4x1xf32, #tpu.memory_space<vmem>>, vector<4x1xf32>
    tpu.vector_store %arg10[%c0_13, %c0_14], %18 {strides = array<i32>} : memref<4x1xf32, #tpu.memory_space<vmem>>, vector<4x1xf32>,
    %c1_i32 = arith.constant 1 : i32
    %20 = arith.cmpi eq, %arg1, %c1_i32 : i32
    %21 = arith.extui %20 : i1 to i32
    %c0_i32_15 = arith.constant 0 : i32
    %22 = arith.cmpi ne, %21, %c0_i32_15 : i32
    scf.if %22 {
      %c0_16 = arith.constant 0 : index
      %c0_17 = arith.constant 0 : index
      %23 = vector.load %arg10[%c0_16, %c0_17] : memref<4x1xf32, #tpu.memory_space<vmem>>, vector<4x1xf32>
      %cst_18 = arith.constant 3.906250e-03 : f32
      %24 = vector.broadcast %cst_18 : f32 to vector<4x1xf32>
      %25 = arith.mulf %23, %24 : vector<4x1xf32>
      %c0_19 = arith.constant 0 : index
      %c0_20 = arith.constant 0 : index
      %26 = vector.load %arg6[%c0_19, %c0_20] : memref<8x4xf32, #tpu.memory_space<vmem>>, vector<8x4xf32>
      %cst_21 = arith.constant dense<0.000000e+00> : vector<8x1xf32>
      %27 = tpu.matmul %26, %25, %cst_21 {dimension_numbers = #tpu.dot_dimension_numbers<[1], [0], [0], [1], [0, 0, 1, 1], [], []>} : vector<8x4xf32>, vector<4x1xf32>, vector<8x1xf32> -> vector<8x1xf32>
      %c0_22 = arith.constant 0 : index
      %c0_23 = arith.constant 0 : index
      %28 = vector.load %arg7[%c0_22, %c0_23] : memref<8x1xf32, #tpu.memory_space<vmem>>, vector<8x1xf32>
      %29 = arith.addf %27, %28 : vector<8x1xf32>
      %cst_24 = arith.constant dense<0xFF800000> : vector<1xf32>
      %30 = vector.multi_reduction <maximumf>, %29, %cst_24 [0] : vector<8x1xf32> to vector<1xf32>
      %31 = vector.shape_cast %30 : vector<1xf32> to vector<1x1xf32>
      %32 = vector.broadcast %31 : vector<1x1xf32> to vector<8x1xf32>
      %33 = arith.subf %29, %32 : vector<8x1xf32>
      %34 = math.exp %33 : vector<8x1xf32>
      %cst_25 = arith.constant dense<0.000000e+00> : vector<1xf32>
      %35 = vector.multi_reduction <add>, %34, %cst_25 [0] : vector<8x1xf32> to vector<1xf32>
      %36 = vector.shape_cast %35 : vector<1xf32> to vector<1x1xf32>
      %37 = math.log %36 : vector<1x1xf32>
      %38 = vector.broadcast %37 : vector<1x1xf32> to vector<8x1xf32>
      %39 = arith.subf %33, %38 : vector<8x1xf32>
      %40 = arith.index_cast %arg0 : i32 to index
      %41 = memref.load %arg2[%40] : memref<2xi32, #tpu.memory_space<smem>>
      %42 = tpu.iota {dimensions = array<i32: 0>} : vector<8x1xi32>
      %43 = vector.broadcast %41 : i32 to vector<8x1xi32>
      %44 = arith.cmpi eq, %42, %43 : vector<8x1xi32>
      %cst_26 = arith.constant 0.000000e+00 : f32
      %45 = vector.broadcast %cst_26 : f32 to vector<8x1xf32>
      %46 = arith.select %44, %39, %45 : vector<8x1xi1>, vector<8x1xf32>
      %47 = vector.shape_cast %46 : vector<8x1xf32> to vector<1x8x1xf32>
      %cst_27 = arith.constant dense<0.000000e+00> : vector<1xf32>
      %48 = vector.multi_reduction <add>, %47, %cst_27 [1, 2] : vector<1x8x1xf32> to vector<1xf32>
      %49 = vector.shape_cast %48 : vector<1xf32> to vector<1x1x1xf32>
      %50 = vector.extract %49[0, 0, 0] : f32 from vector<1x1x1xf32>
      %cst_28 = arith.constant 0.000000e+00 : f32
      %51 = arith.subf %cst_28, %50 : f32
      %52 = vector.broadcast %51 : f32 to vector<1x8x128xf32>
      %c0_29 = arith.constant 0 : index
      %c0_30 = arith.constant 0 : index
      %c0_31 = arith.constant 0 : index
      %53 = vector.load %arg9[%c0_29, %c0_30, %c0_31] : memref<1x8x128xf32, #tpu.memory_space<vmem>>, vector<1x8x128xf32>
      tpu.vector_store %arg9[%c0_29, %c0_30, %c0_31], %52 {strides = array<i32>} : memref<1x8x128xf32, #tpu.memory_space<vmem>>, vector<1x8x128xf32>,
    } else {
    }
    return
  }
  func.func @transform_0(%arg0: i32, %arg1: i32, %arg2: memref<2xi32, #tpu.memory_space<smem>>) -> (i32, i32, i32) {
    %c0_i32 = arith.constant 0 : i32
    %c0_i32_0 = arith.constant 0 : i32
    return %arg0, %c0_i32, %arg1 : i32, i32, i32
  }
  func.func @transform_1(%arg0: i32, %arg1: i32, %arg2: memref<2xi32, #tpu.memory_space<smem>>) -> (i32, i32) {
    %c0_i32 = arith.constant 0 : i32
    %c0_i32_0 = arith.constant 0 : i32
    %c0_i32_1 = arith.constant 0 : i32
    return %c0_i32, %c0_i32_0 : i32, i32
  }
  func.func @transform_2(%arg0: i32, %arg1: i32, %arg2: memref<2xi32, #tpu.memory_space<smem>>) -> (i32, i32) {
    %c0_i32 = arith.constant 0 : i32
    %c0_i32_0 = arith.constant 0 : i32
    %c0_i32_1 = arith.constant 0 : i32
    return %c0_i32, %c0_i32_0 : i32, i32
  }
  func.func @transform_3(%arg0: i32, %arg1: i32, %arg2: memref<2xi32, #tpu.memory_space<smem>>) -> (i32, i32) {
    %c0_i32 = arith.constant 0 : i32
    %c0_i32_0 = arith.constant 0 : i32
    %c0_i32_1 = arith.constant 0 : i32
    return %c0_i32, %c0_i32_0 : i32, i32
  }
  func.func @transform_4(%arg0: i32, %arg1: i32, %arg2: memref<2xi32, #tpu.memory_space<smem>>) -> (i32, i32) {
    %c0_i32 = arith.constant 0 : i32
    %c0_i32_0 = arith.constant 0 : i32
    %c0_i32_1 = arith.constant 0 : i32
    return %c0_i32, %c0_i32_0 : i32, i32
  }
  func.func @transform_5(%arg0: i32, %arg1: i32, %arg2: memref<2xi32, #tpu.memory_space<smem>>) -> (i32, i32, i32) {
    %c0_i32 = arith.constant 0 : i32
    %c0_i32_0 = arith.constant 0 : i32
    return %arg0, %c0_i32, %arg1 : i32, i32, i32
  }
  func.func @transform_6(%arg0: i32, %arg1: i32, %arg2: memref<2xi32, #tpu.memory_space<smem>>) -> (i32, i32, i32) {
    %c0_i32 = arith.constant 0 : i32
    %c0_i32_0 = arith.constant 0 : i32
    %c0_i32_1 = arith.constant 0 : i32
    return %arg0, %c0_i32, %c0_i32_0 : i32, i32, i32
  }
}

</mosaic_0001>

<bundles_post_ra>
// kernel: _loss_classifier_impl.1
= control target key start
LH: loop header
LB: loop body
LE: loop exit
PB: predicated region body
PF: predicated region fallthrough
CT: control target
= control target key end

     0   :  { %s898_s0 = inlined_call_operand.vmem [shape: s32[2], index: 0, kind: input, shape index: {}]   ;;  %s899_s1 = inlined_call_operand.vmem [shape: f32[2,4,256], index: 1, kind: input, shape index: {}]   ;;  %s900_s2 = inlined_call_operand.vmem [shape: bf16[4,4], index: 2, kind: input, shape index: {}]   ;;  %s901_s3 = inlined_call_operand.vmem [shape: f32[4,1], index: 3, kind: input, shape index: {}]   ;;  %s902_s4 = inlined_call_operand.vmem [shape: f32[8,4], index: 4, kind: input, shape index: {}]   ;;  %s903_s5 = inlined_call_operand.vmem [shape: f32[8,1], index: 5, kind: input, shape index: {}]   ;;  %s904_s6 = inlined_call_operand.vmem [shape: f32[2,4,256], index: 6, kind: output, shape index: {0}]   ;;  %s905_s7 = inlined_call_operand.vmem [shape: f32[2,8,128], index: 7, kind: output, shape index: {1}]  }
   0x1   :  { %s13_s26 = sshll.u32 %s898_s0, 4  ;;  %s14_s26 = int_to_ptr.vmem [resolvable:$true] %s13_s26 }
   0x2   :  { %s704_s27 = scalar_lea.vmem %s14_s26, 16  ;;  %p709_p1 = scmp.lt.s32.totalorder %s14_s26, %s14_s26 }
   0x3   :  { %p705_p0 = scmp.ne.s32.totalorder %s14_s26, %s704_s27  ;;  %p710_p2 = scmp.lt.s32.totalorder %s704_s27, %s704_s27 }
   0x5   :  { %p711_p3 = por %p710_p2, %p709_p1 }
   0x7   :  { %p712_p4 = pnand %p711_p3, %p705_p0 }
   0x9   :  { %715 = shalt.err (!%p712_p4)  }
   0xa   :  { %s758_s28 = smov [#allocation4]  }
   0xb   :  { %16 = dma.vmem_to_smem %s14_s26, 16, %s758_s28, [#allocation3] }
   0xc   :  { %736 = dma.done.wait [#allocation3], 16 }
   0xd   :  { %737 = vsyncadd [#allocation3], 4294967280 }
   0xe   :  { %18 = sfence }
   0xf   :  { %s808_s29 = smov 0   ;;  %s810_s30 = smov 0  }
  0x10   :  { %s812_s8 = smov 0   ;;  %s814_s0 = smov 0  }
  0x11   :  { %s816_s9 = smov 0  }
  0x12 LB: > { %s33_s10 = sadd.s32 1, %s748_s8  ;;  %s36_s11 = sadd.s32 1, %s752_s0  ;;  %s756_s9 = sphi %s816_s9, %s24_s9   ;;  %s752_s0 = sphi %s814_s0, %s909_s0   ;;  %s748_s8 = sphi %s812_s8, %s908_s8   ;;  %s744_s30 = sphi %s810_s30, %s907_s30   ;;  %s740_s29 = sphi %s808_s29, %s906_s29  }
  0x13   : > { %p34_p5 = scmp.ge.s32.totalorder %s33_s10, 2  ;;  %p620_p6 = scmp.ge.s32.totalorder %s756_s9, 1 }
  0x14   : > { %p241_p7 = scmp.lt.s32.totalorder %s756_s9, 5 }
  0x15   : > { %s911_s10 = smov (%p34_p5, %s33_s10), 0  ;;  %s913_s11 = smov (!%p34_p5, %s36_s11), %s752_s0 }
  0x16   : > { %p242_p8 = pnand %p620_p6, %p241_p7  ;;  %p38_p9 = scmp.ge.s32.totalorder %s913_s11, 2 }
  0x17   : > { %p281_p10 = scmp.lt.s32.totalorder (!%p242_p8), %s744_s30, 1  ;;  %p283_p11 = scmp.lt.s32.totalorder (!%p242_p8), %s740_s29, 1 }
  0x18   : > { %s915_s11 = smov (%p38_p9, %s913_s11), 0  ;;  %245 = sbr.rel (%p242_p8) target bundleno = 910 (0x38e), region = 40 }
  0x19   : > { %p626_p12 = scmp.ne.s32.totalorder (!%p242_p8), %s740_s29, 0 }
  0x1f   : > { %s282_s12 = scalar_select %p281_p10, %s744_s30, 1 }
  0x20   : > { %s284_s13 = scalar_select %p283_p11, %s740_s29, 1 }
  0x21   : > { %s621_s14 = sshll.u32 %s282_s12, 1  ;;  %s625_s15 = sshll.u32 %s282_s12, 3  ;;  %vm306_vm0 = vcmask (!%p626_p12), 3072   ;;  %v759_v0 = vmov (!%p626_p12), 0.0  }
  0x22   : > { %s286_s16 = sadd.s32 %s621_s14, %s284_s13  ;;  %s849_s19 = scalar_lea.vmem %s905_s7, %s625_s15  ;;  %307 = vst.msk [vmem:[#allocation2] sm:$0xf] (!%p626_p12), %vm306_vm0, %v759_v0 }
  0x23   : > { %s622_s20 = sshll.u32 %s286_s16, 2  ;;  %305 = sbr.rel (%p626_p12) target bundleno = 42 (0x2a), region = 44 }
  0x24   : > { %s288_s23 = scalar_lea.vmem %s899_s1, %s622_s20  ;;  %s857_s26 = scalar_lea.vmem %s904_s6, %s622_s20 }
  0x2a PF: > { %v308_v1 = vld [vmem:[%s288_s23] sm:$0xf]  ;;  %vm321_vm1 = vcmask 1041408   ;;  %v760_v2 = vmov 0.0   ;;  %vm761_vm2 = vmmov 0   ;;  %v762_v5 = vmov 0  }
  0x2b   : > { %637 = vmatprep.subr.bf16.mxu0 %v760_v2  ;;  %v309_v3 = vpack.c.bf16 %v308_v1, %v308_v1  ;;  %639 = vmatprep.mubr.msk.bf16.mxu0 %vm761_vm2, %v760_v2  ;;  %v311_v4 = vld [vmem:[%s901_s3] sm:$0xf]  ;;  %vm317_vm3 = vcmask 31744   ;;  %vm368_vm4 = vcmask 1043456   ;;  %vm373_vm5 = vcmask 3072   ;;  %p628_p13 = scmp.ne.s32.totalorder %s740_s29, 1 }
  0x2c   : > { %697 = vset.pattern.permute.xlu0 %v762_v5  ;;  %v310_v7 = vld [vmem:[%s900_s2] sm:$0x3]  ;;  %v763_v20 = vmov (!%p628_p13), 0.0   ;;  %vm764_vm6 = vmmov (!%p628_p13), 0   ;;  %vm459_vm7 = vcmask (!%p628_p13), 7168   ;;  %s480_s29 = sld [smem:[#allocation4 + %s744_s30]] (!%p628_p13)  ;;  %v481_v44 = vlaneseq (!%p628_p13) }
  0x2d   : > { %v323_v6 = vsel %vm321_vm1, %v309_v3, 0  ;;  %314 = vperm.xlu0 %697, %v311_v4   ;;  %v367_v16 = vld [vmem:[#allocation2] sm:$0xf] }
  0x2e   : > { %638 = vmatpush3.bf16.msra.mxu0 %v323_v6  ;;  %v381_v22 = vld [vmem:[%s902_s4] sm:$0xff] (!%p628_p13)  ;;  %v482_v45 = vshrl.u32 (!%p628_p13), %v481_v44, 7 }
  0x2f   : > { %643 = vmatprep.subr.mxu0 (!%p628_p13), %v763_v20  ;;  %v382_v23 = vld [vmem:[%s903_s5] sm:$0xff] (!%p628_p13) }
  0x31   : > { %640 = vmatmul.mubr.msk.bf16.vlgmr.msra.gmra.mrb[0].mxu0 %vm317_vm3, %v310_v7 }
  0x32   : > { %645 = vmatprep.mubr.msk.f32.mxu0 (!%p628_p13), %vm764_vm6, %v763_v20  ;;  %v483_v46 = vstv (!%p628_p13), %s480_s29 }
  0x33   : > { %vm484_vm8 = vcmp.eq.s32.totalorder (!%p628_p13), %v482_v45, %v483_v46 }
  0xac   : > { %v315_v8 = vpop.permute.xlu0 %314 }
 0x104   : > { %v359_v9 = vpop.f32.mrb[0].mxu0 }
 0x105   : > { %v360_v10 = vadd.f32 %v359_v9, %v315_v8  ;;  %v641_v11 = vpop.f32.mrb[1].mxu0 }
 0x106   : > { %v362_v12 = vpop.f32.mrb[2].mxu0 }
 0x107   : > { %698 = vtanh.f32 %v360_v10  ;;  %v642_v13 = vpop.f32.mrb[3].mxu0 }
 0x111   : > { %v699_v14 = vpop.eup %698 }
 0x112   : > { %366 = vst [vmem:[%s857_s26] sm:$0xf] %v699_v14  ;;  %v369_v15 = vsel %vm368_vm4, %v699_v14, 0.0 }
 0x113   : > { %370 = vadd.xlane.f32.xlu0 %v369_v15 }
 0x19d   : > { %378 = sbr.rel (%p628_p13) target bundleno = 910 (0x38e), region = 48 }
 0x1a0   : > { %v371_v17 = vpop.xlane.xlu0 %370 }
 0x1a1   : > { %v372_v18 = vadd.f32 %v371_v17, %v367_v16 }
 0x1a3   : > { %374 = vst.msk [vmem:[#allocation2] sm:$0xf] %vm373_vm5, %v372_v18 }
 0x1aa   : > { %v379_v19 = vld [vmem:[#allocation2] sm:$0xf] }
 0x1ab   : > { %v380_v21 = vmul.f32 0.00390625, %v379_v19 }
 0x1ad   : > { %644 = vmatpush3.msk.msra.mxu0 %vm368_vm4, %v380_v21 }
 0x1ae   : > { %646 = vmatmul.mubr.msk.f32.vlgmr.msra.gmra.mrb[0].mxu0 %vm317_vm3, %v381_v22 }
 0x281   : > { %v455_v24 = vpop.f32.mrb[0].mxu0 }
 0x282   : > { %v456_v25 = vadd.f32 %v455_v24, %v382_v23  ;;  %v647_v26 = vpop.f32.mrb[1].mxu0 }
 0x284   : > { %v460_v27 = vsel %vm459_vm7, %v456_v25, -inf }
 0x285   : > { %v461_v28 = vrot.slane %v460_v27, 4 }
 0x287   : > { %v462_v29 = vmax.f32 %v460_v27, %v461_v28 }
 0x289   : > { %v463_v30 = vrot.slane %v462_v29, 2 }
 0x28b   : > { %v464_v31 = vmax.f32 %v462_v29, %v463_v30 }
 0x28d   : > { %v465_v32 = vrot.slane %v464_v31, 1 }
 0x28f   : > { %v466_v33 = vmax.f32 %v464_v31, %v465_v32 }
 0x291   : > { %v467_v34 = vsub.f32 %v456_v25, %v466_v33 }
 0x293   : > { %v468_v35 = vmul.f32 1.442695, %v467_v34 }
 0x295   : > { %700 = vpow2.f32 %v468_v35 }
 0x29f   : > { %v701_v36 = vpop.eup %700 }
 0x2a0   : > { %v470_v37 = vsel %vm459_vm7, %v701_v36, 0.0 }
 0x2a1   : > { %v471_v38 = vrot.slane %v470_v37, 4 }
 0x2a3   : > { %v472_v39 = vadd.f32 %v471_v38, %v470_v37 }
 0x2a5   : > { %v473_v40 = vrot.slane %v472_v39, 2 }
 0x2a7   : > { %v474_v41 = vadd.f32 %v473_v40, %v472_v39 }
 0x2a9   : > { %v475_v42 = vrot.slane %v474_v41, 1 }
 0x2ab   : > { %v476_v43 = vadd.f32 %v475_v42, %v474_v41 }
 0x2ad   : > { %702 = vlog2.f32 %v476_v43 }
 0x2b7   : > { %v703_v47 = vpop.eup %702 }
 0x2b8   : > { %v478_v48 = vmul.f32 0.6931472, %v703_v47 }
 0x2ba   : > { %v479_v49 = vsub.f32 %v467_v34, %v478_v48 }
 0x2bc   : > { %v485_v50 = vsel %vm484_vm8, %v479_v49, 0.0 }
 0x2bd   : > { %v486_v51 = vsel %vm459_vm7, %v485_v50, 0.0 }
 0x2be   : > { %487 = vadd.xlane.f32.xlu0 %v486_v51 }
 0x34b   : > { %v488_v52 = vpop.xlane.xlu0 %487 }
 0x34c   : > { %v489_v53 = vrot.slane %v488_v52, 4 }
 0x34e   : > { %v490_v54 = vadd.f32 %v489_v53, %v488_v52 }
 0x350   : > { %v491_v55 = vrot.slane %v490_v54, 2 }
 0x352   : > { %v492_v56 = vadd.f32 %v491_v55, %v490_v54 }
 0x354   : > { %v493_v57 = vrot.slane %v492_v56, 1 }
 0x356   : > { %v494_v58 = vadd.f32 %v493_v57, %v492_v56 }
 0x358   : > { %648 = vpush %v494_v58 }
 0x389   : > { %s649_s30 = spop %648 }
 0x38a   : > { %s496_s18 = ssub.f32 0.0, %s649_s30 }
 0x38c   : > { %v497_v59 = vstv %s496_s18 }
 0x38d   : > { %498 = vst [vmem:[%s849_s19] sm:$0xff] %v497_v59 }
 0x38e PF: > { %s24_s9 = sadd.s32 1, %s756_s9   ;;  %s906_s29 = smov %s748_s8 }
 0x38f   : > { %p21_p0 = scmp.ge.s32.totalorder %s24_s9, 6   ;;  %s907_s30 = smov %s752_s0 }
 0x390   : > { %s908_s8 = smov %s911_s10  ;;  %s909_s0 = smov %s915_s11 }
 0x391   :  { %23 = sbr.rel (!%p21_p0) target bundleno = 18 (0x12), region = 90 }

</bundles_post_ra>
